<compile_context>
chip_gen: v6e
topology: v6e:2x2x1
jax: 0.10.0
libtpu: 0.0.40
codegen_flags: <defaults>
</compile_context>

<pallas_src>
import jax
import jax.numpy as jnp
from jax.experimental import pallas as pl
from jax.experimental.pallas import tpu as pltpu


def _mish_kernel(x_ref, o_ref):
    x = x_ref[...].astype(jnp.float32)
    # t = exp(-|x|) is in (0, 1] -> never overflows, single EUP op.
    t = jnp.exp(-jnp.abs(x))
    # tanh(softplus(x)) as a rational function of t (derived from
    # e^{softplus(x)} = 1 + e^x, split on the sign of x for stability):
    #   x >  0 : (1 + 2t)    / (1 + 2t + 2t^2)
    #   x <= 0 : (2t + t^2)  / (2 + 2t + t^2)
    pos = x > 0
    num = jnp.where(pos, 1.0 + 2.0 * t, t * (t + 2.0))
    den = jnp.where(pos, 1.0 + 2.0 * t + 2.0 * t * t, 2.0 + 2.0 * t + t * t)
    y = x * (num / den)
    o_ref[...] = y.astype(o_ref.dtype)


def mish(x, *, tile_rows=2048, lanes=512):
    """Elementwise Mish. Accepts any shape; flattens to (rows, lanes) internally."""
    assert lanes % 128 == 0 and tile_rows % 8 == 0
    orig_shape = x.shape
    orig_dtype = x.dtype
    n = x.size

    flat = x.reshape(-1)
    pad = (-n) % lanes  # pad only to the lane boundary (usually 0), not to a full tile
    if pad:
        flat = jnp.pad(flat, (0, pad))
    rows = flat.size // lanes
    x2d = flat.reshape(rows, lanes)

    # Clamp the row tile for small inputs; when clamped the block equals the
    # full row extent, which satisfies the (8,128) BlockSpec rule.
    tr = min(tile_rows, rows)
    grid = (pl.cdiv(rows, tr),)

    out2d = pl.pallas_call(
        _mish_kernel,
        out_shape=jax.ShapeDtypeStruct((rows, lanes), orig_dtype),
        grid_spec=pltpu.PrefetchScalarGridSpec(
            num_scalar_prefetch=0,
            grid=grid,
            in_specs=[pl.BlockSpec((tr, lanes), lambda i: (i, 0))],
            out_specs=pl.BlockSpec((tr, lanes), lambda i: (i, 0)),
        ),
        compiler_params=pltpu.CompilerParams(
            # Single parallel axis: shards across the 2 TensorCores on v7x,
            # no-op on v5e/v6e.
            dimension_semantics=("parallel",),
            # Explicit VMEM budget: ~16 MiB actually used (2 arrays x 2 bufs x
            # 4 MiB); 48 MiB cap leaves headroom yet stays under v7x's 64 MiB.
            vmem_limit_bytes=48 * 1024 * 1024,
        ),
        cost_estimate=pl.CostEstimate(
            flops=10 * n,
            transcendentals=n,
            bytes_accessed=2 * n * x.dtype.itemsize,
        ),
    )(x2d)

    if pad:
        out = out2d.reshape(-1)[:n].reshape(orig_shape)
    else:
        out = out2d.reshape(orig_shape)
    return out


def mish_reference(x):
    xf = x.astype(jnp.float32)
    return (xf * jnp.tanh(jax.nn.softplus(xf))).astype(x.dtype)


if __name__ == "__main__":
    key = jax.random.PRNGKey(0)

    # Small NCHW tensor consistent with how Mish is used inside DGCNN.
    x = jax.random.normal(key, (2, 4, 16, 16), dtype=jnp.float32) * 3.0
    y = jax.block_until_ready(mish(x))
    y_ref = mish_reference(x)
    assert y.shape == x.shape and y.dtype == x.dtype
    assert jnp.allclose(y, y_ref, atol=1e-5, rtol=1e-5)

    # Exercise the ragged / padding path with a lane-unaligned size.
    x2 = jax.random.normal(jax.random.PRNGKey(1), (2, 3, 5, 7), dtype=jnp.float32) * 5.0
    y2 = jax.block_until_ready(mish(x2))
    assert y2.shape == x2.shape
    assert jnp.allclose(y2, mish_reference(x2), atol=1e-5, rtol=1e-5)

    print("KERNEL_OK")
</pallas_src>

<mosaic_0001>
module attributes {stable_mosaic.version = 11 : i64} {
  func.func @_mish_kernel(%arg0: i32, %arg1: memref<4x512xf32, #tpu.memory_space<vmem>>, %arg2: memref<4x512xf32, #tpu.memory_space<vmem>>) attributes {dimension_semantics = [#tpu.dimension_semantics<parallel>], iteration_bounds = array<i64: 1>, scalar_prefetch = 0 : i64, scratch_operands = 0 : i64, tpu.core_type = #tpu.core_type<tc>, window_params = [{transform_indices = @transform_0, window_bounds = array<i64: 4, 512>}, {transform_indices = @transform_1, window_bounds = array<i64: 4, 512>}]} {
    %c0 = arith.constant 0 : index
    %c0_0 = arith.constant 0 : index
    %0 = vector.load %arg1[%c0, %c0_0] : memref<4x512xf32, #tpu.memory_space<vmem>>, vector<4x512xf32>
    %1 = math.absf %0 : vector<4x512xf32>
    %cst = arith.constant 0.000000e+00 : f32
    %2 = vector.broadcast %cst : f32 to vector<4x512xf32>
    %3 = arith.subf %2, %1 : vector<4x512xf32>
    %4 = math.exp %3 : vector<4x512xf32>
    %cst_1 = arith.constant 0.000000e+00 : f32
    %5 = vector.broadcast %cst_1 : f32 to vector<4x512xf32>
    %6 = arith.cmpf ogt, %0, %5 : vector<4x512xf32>
    %cst_2 = arith.constant 2.000000e+00 : f32
    %7 = vector.broadcast %cst_2 : f32 to vector<4x512xf32>
    %8 = arith.mulf %7, %4 : vector<4x512xf32>
    %cst_3 = arith.constant 1.000000e+00 : f32
    %9 = vector.broadcast %cst_3 : f32 to vector<4x512xf32>
    %10 = arith.addf %9, %8 : vector<4x512xf32>
    %cst_4 = arith.constant 2.000000e+00 : f32
    %11 = vector.broadcast %cst_4 : f32 to vector<4x512xf32>
    %12 = arith.addf %4, %11 : vector<4x512xf32>
    %13 = arith.mulf %4, %12 : vector<4x512xf32>
    %14 = arith.select %6, %10, %13 : vector<4x512xi1>, vector<4x512xf32>
    %cst_5 = arith.constant 2.000000e+00 : f32
    %15 = vector.broadcast %cst_5 : f32 to vector<4x512xf32>
    %16 = arith.mulf %15, %4 : vector<4x512xf32>
    %cst_6 = arith.constant 1.000000e+00 : f32
    %17 = vector.broadcast %cst_6 : f32 to vector<4x512xf32>
    %18 = arith.addf %17, %16 : vector<4x512xf32>
    %cst_7 = arith.constant 2.000000e+00 : f32
    %19 = vector.broadcast %cst_7 : f32 to vector<4x512xf32>
    %20 = arith.mulf %19, %4 : vector<4x512xf32>
    %21 = arith.mulf %20, %4 : vector<4x512xf32>
    %22 = arith.addf %18, %21 : vector<4x512xf32>
    %cst_8 = arith.constant 2.000000e+00 : f32
    %23 = vector.broadcast %cst_8 : f32 to vector<4x512xf32>
    %24 = arith.mulf %23, %4 : vector<4x512xf32>
    %cst_9 = arith.constant 2.000000e+00 : f32
    %25 = vector.broadcast %cst_9 : f32 to vector<4x512xf32>
    %26 = arith.addf %25, %24 : vector<4x512xf32>
    %27 = arith.mulf %4, %4 : vector<4x512xf32>
    %28 = arith.addf %26, %27 : vector<4x512xf32>
    %29 = arith.select %6, %22, %28 : vector<4x512xi1>, vector<4x512xf32>
    %30 = arith.divf %14, %29 : vector<4x512xf32>
    %31 = arith.mulf %0, %30 : vector<4x512xf32>
    %c0_10 = arith.constant 0 : index
    %c0_11 = arith.constant 0 : index
    %32 = vector.load %arg2[%c0_10, %c0_11] : memref<4x512xf32, #tpu.memory_space<vmem>>, vector<4x512xf32>
    tpu.vector_store %arg2[%c0_10, %c0_11], %31 {strides = array<i32>} : memref<4x512xf32, #tpu.memory_space<vmem>>, vector<4x512xf32>,
    return
  }
  func.func @transform_0(%arg0: i32) -> (i32, i32) {
    %c0_i32 = arith.constant 0 : i32
    %c0_i32_0 = arith.constant 0 : i32
    return %arg0, %c0_i32 : i32, i32
  }
  func.func @transform_1(%arg0: i32) -> (i32, i32) {
    %c0_i32 = arith.constant 0 : i32
    %c0_i32_0 = arith.constant 0 : i32
    return %arg0, %c0_i32 : i32, i32
  }
}

</mosaic_0001>

<bundles_post_ra>
// kernel: tpu_custom_call.1
= control target key start
LH: loop header
LB: loop body
LE: loop exit
PB: predicated region body
PF: predicated region fallthrough
CT: control target
= control target key end

     0   :  { %6 = vsyncpa [#allocation3], 0  ;;  %s152_s0 = inlined_call_operand.hbm [shape: f32[4,512], index: 0, kind: input, shape index: {}]   ;;  %s153_s1 = inlined_call_operand.hbm [shape: f32[4,512], index: 1, kind: output, shape index: {}]  }
   0x1   :  { %7 = vsyncpa [#allocation4], 0  ;;  %s132_s6 = smov [#allocation2]  }
   0x2   :  { %s14_s7 = sshll.u32 %s132_s6, 4  ;;  %s15_s7 = int_to_ptr.vmem [resolvable:$true] %s14_s7 }
   0x3   :  { %s96_s8 = scalar_lea.vmem %s15_s7, 256  ;;  %p101_p1 = scmp.lt.s32.totalorder %s15_s7, %s15_s7 }
   0x4   :  { %p97_p0 = scmp.ne.s32.totalorder %s15_s7, %s96_s8  ;;  %p102_p2 = scmp.lt.s32.totalorder %s96_s8, %s96_s8 }
   0x6   :  { %p103_p3 = por %p102_p2, %p101_p1 }
   0x8   :  { %p104_p4 = pnand %p103_p3, %p97_p0 }
   0xa   :  { %107 = shalt.err (!%p104_p4)
}
   0xb   :  { %17 = dma.hbm_to_vmem [thread:$0]  %s152_s0, 256, %s15_s7, [#allocation3]  }
   0xc   :  { %128 = dma.done.wait [#allocation3], 256  }
   0xd   :  { %129 = vsyncadd [#allocation3], 4294967040  ;;  %v21_v0 = vld [vmem:[#allocation2] sm:$0xff]  ;;  %v22_v1 = vld [vmem:[#allocation2 + $0x8] sm:$0xff]  ;;  %s133_s0 = smov [#allocation5]  }
   0xe   :  { %v23_v2 = vand.u32 2147483647, %v21_v0  ;;  %v24_v3 = vand.u32 2147483647, %v22_v1  ;;  %vm31_vm0 = vcmp.gt.f32.partialorder %v21_v0, 0.0  ;;  %vm32_vm1 = vcmp.gt.f32.partialorder %v22_v1, 0.0 }
   0xf   :  { %s69_s11 = sshll.u32 %s133_s0, 4  ;;  %s70_s11 = int_to_ptr.vmem [resolvable:$true] %s69_s11 }
  0x10   :  { %v25_v4 = vsub.f32 0.0, %v23_v2  ;;  %v26_v5 = vsub.f32 0.0, %v24_v3  ;;  %s108_s12 = scalar_lea.vmem %s70_s11, 256  ;;  %p113_p6 = scmp.lt.s32.totalorder %s70_s11, %s70_s11 }
  0x11   :  { %p109_p5 = scmp.ne.s32.totalorder %s70_s11, %s108_s12  ;;  %p114_p7 = scmp.lt.s32.totalorder %s108_s12, %s108_s12 }
  0x12   :  { %v27_v6 = vmul.f32 1.442695, %v25_v4  ;;  %v29_v7 = vmul.f32 1.442695, %v26_v5 }
  0x13   :  { %p115_p8 = por %p114_p7, %p113_p6 }
  0x14   :  { %80 = vpow2.f32 %v27_v6 }
  0x15   :  { %82 = vpow2.f32 %v29_v7  ;;  %p116_p9 = pnand %p115_p8, %p109_p5 }
  0x21   :  { %v81_v8 = vpop.eup %80 }
  0x22   :  { %v83_v9 = vpop.eup %82  ;;  %v33_v10 = vmul.f32 2.0, %v81_v8  ;;  %v49_v11 = vmul.f32 %v81_v8, %v81_v8  ;;  %v37_v26 = vadd.f32 2.0, %v81_v8 }
  0x23   :  { %v34_v12 = vmul.f32 2.0, %v83_v9  ;;  %v50_v13 = vmul.f32 %v83_v9, %v83_v9  ;;  %v38_v27 = vadd.f32 2.0, %v83_v9 }
  0x24   :  { %v35_v14 = vadd.f32 1.0, %v33_v10  ;;  %v43_v15 = vmul.f32 %v81_v8, %v33_v10  ;;  %v47_v16 = vadd.f32 2.0, %v33_v10  ;;  %v39_v28 = vmul.f32 %v81_v8, %v37_v26 }
  0x25   :  { %v36_v17 = vadd.f32 1.0, %v34_v12  ;;  %v44_v18 = vmul.f32 %v83_v9, %v34_v12  ;;  %v48_v19 = vadd.f32 2.0, %v34_v12  ;;  %v40_v29 = vmul.f32 %v83_v9, %v38_v27 }
  0x26   :  { %v45_v20 = vadd.f32 %v43_v15, %v35_v14  ;;  %v51_v21 = vadd.f32 %v49_v11, %v47_v16  ;;  %v41_v30 = vsel %vm31_vm0, %v35_v14, %v39_v28 }
  0x27   :  { %v46_v22 = vadd.f32 %v44_v18, %v36_v17  ;;  %v52_v23 = vadd.f32 %v50_v13, %v48_v19  ;;  %v42_v31 = vsel %vm32_vm1, %v36_v17, %v40_v29 }
  0x28   :  { %v53_v24 = vsel %vm31_vm0, %v45_v20, %v51_v21 }
  0x29   :  { %84 = vrcp.f32 %v53_v24  ;;  %v54_v25 = vsel %vm32_vm1, %v46_v22, %v52_v23 }
  0x2a   :  { %86 = vrcp.f32 %v54_v25 }
  0x36   :  { %v85_v32 = vpop.eup %84 }
  0x37   :  { %v87_v33 = vpop.eup %86  ;;  %v56_v34 = vmul.f32 %v85_v32, %v41_v30 }
  0x38   :  { %v58_v35 = vmul.f32 %v87_v33, %v42_v31 }
  0x39   :  { %v59_v36 = vmul.f32 %v56_v34, %v21_v0 }
  0x3a   :  { %v60_v37 = vmul.f32 %v58_v35, %v22_v1 }
  0x3b   :  { %61 = vst [vmem:[#allocation5] sm:$0xff] %v59_v36 }
  0x3c   :  { %62 = vst [vmem:[#allocation5 + $0x8] sm:$0xff] %v60_v37 }
  0x3d   :  { %119 = shalt.err (!%p116_p9)
}
  0x3e   :  { %72 = dma.vmem_to_hbm [thread:$0]  %s70_s11, 256, %s153_s1, [#allocation4]  }
  0x3f   :  { %130 = dma.done.wait [#allocation4], 256  }
  0x40   :  { %131 = vsyncadd [#allocation4], 4294967040 }
  0x41   :  { %76 = vsyncpa [#allocation3], 1 }
  0x42   :  { %77 = vsyncpa [#allocation4], 1 }

</bundles_post_ra>
